<compile_context>
chip_gen: v7x
topology: tpu7x:2x2x1
jax: 0.10.0
libtpu: 0.0.40
codegen_flags: <defaults>
</compile_context>

<pallas_src>
import functools
import math

import jax
import jax.numpy as jnp
from jax import lax
from jax.experimental import pallas as pl
from jax.experimental.pallas import tpu as pltpu  # noqa: F401  (TPU backend)


# --------------------------------------------------------------------------
# Fused positional-encoding kernel: freq gen + scale + sin/cos, single store
# --------------------------------------------------------------------------
def _posenc_kernel(noise_ref, o_ref, *, count):
    # noise_ref: (B, 1) f32     o_ref: (B, 2*count) f32
    width = o_ref.shape[1]                    # = 2*count
    # Column index over the FULL output width -> no concat, no relayout.
    col = lax.broadcasted_iota(jnp.int32, (1, width), 1)          # (1, 2C)
    is_sin = col < count                                          # (1, 2C)
    base = jnp.where(is_sin, col, col - count).astype(jnp.float32)
    # Frequencies depend only on the column: compute once on a (1, 2C) row
    # (batch-hoisted exp), broadcast over B in the multiply below.
    freq = jnp.exp(base * jnp.float32(-math.log(10000.0) / count))  # (1, 2C)
    enc = noise_ref[...] * freq                                     # (B, 2C)
    # Exact sin/cos per half; select lowers to VPU, sin/cos to the EUP slot.
    o_ref[...] = jnp.where(is_sin, jnp.sin(enc), jnp.cos(enc))


def positional_encoding(noise_level, dim):
    """noise_level: (B,) float array -> (B, 2*(dim//2)) sinusoidal embedding."""
    count = dim // 2
    width = 2 * count
    B = noise_level.shape[0]
    noise_2d = noise_level.reshape(B, 1).astype(jnp.float32)

    cost = pl.CostEstimate(
        flops=B * width,                       # the noise * freq multiply
        transcendentals=2 * B * width + width,  # sin + cos over block, exp over row
        bytes_accessed=4 * B * (1 + width),     # read (B,1), write (B, 2C)
    )
    return pl.pallas_call(
        functools.partial(_posenc_kernel, count=count),
        out_shape=jax.ShapeDtypeStruct((B, width), jnp.float32),
        # No grid: single invocation, full arrays as one VMEM block each.
        in_specs=[pl.BlockSpec((B, 1), lambda: (0, 0))],
        out_specs=pl.BlockSpec((B, width), lambda: (0, 0)),
        cost_estimate=cost,
    )(noise_2d)


# --------------------------------------------------------------------------
# Pure-JAX reference (mirrors the PyTorch forward exactly)
# --------------------------------------------------------------------------
def reference(noise_level, dim):
    count = dim // 2
    step = jnp.arange(count, dtype=noise_level.dtype) / count
    enc = noise_level[:, None] * jnp.exp(-math.log(10000.0) * step[None, :])
    return jnp.concatenate([jnp.sin(enc), jnp.cos(enc)], axis=-1)


if __name__ == "__main__":
    key = jax.random.PRNGKey(0)
    B = 8
    # Typical diffusion noise-level scalars in a modest range.
    noise_level = jax.random.uniform(key, (B,), jnp.float32, minval=0.0, maxval=10.0)

    # Primary check: lane-dense output (dim=256 -> 256-wide row, unmasked vst).
    dim = 256
    fwd = jax.jit(functools.partial(positional_encoding, dim=dim))
    out = fwd(noise_level)
    jax.block_until_ready(out)
    ref = reference(noise_level, dim)
    assert out.shape == (B, 2 * (dim // 2)), out.shape
    err = float(jnp.max(jnp.abs(out - ref)))
    assert err < 1e-5, f"mismatch vs reference (dim={dim}): {err}"

    # Secondary check: narrow (sub-128-lane) output, e.g. dim=64.
    dim2 = 64
    out2 = jax.jit(functools.partial(positional_encoding, dim=dim2))(noise_level)
    jax.block_until_ready(out2)
    ref2 = reference(noise_level, dim2)
    err2 = float(jnp.max(jnp.abs(out2 - ref2)))
    assert out2.shape == (B, 2 * (dim2 // 2)), out2.shape
    assert err2 < 1e-5, f"mismatch vs reference (dim={dim2}): {err2}"

    print("KERNEL_OK")
</pallas_src>

<mosaic_0001>
module attributes {stable_mosaic.version = 11 : i64} {
  func.func @_posenc_kernel(%arg0: memref<8x1xf32, #tpu.memory_space<vmem>>, %arg1: memref<8x256xf32, #tpu.memory_space<vmem>>) attributes {dimension_semantics = [], scalar_prefetch = 0 : i64, scratch_operands = 0 : i64, tpu.core_type = #tpu.core_type<tc>} {
    %0 = tpu.iota {dimensions = array<i32: 1>} : vector<1x256xi32>
    %c128_i32 = arith.constant 128 : i32
    %1 = vector.broadcast %c128_i32 : i32 to vector<1x256xi32>
    %2 = arith.cmpi slt, %0, %1 : vector<1x256xi32>
    %c128_i32_0 = arith.constant 128 : i32
    %3 = vector.broadcast %c128_i32_0 : i32 to vector<1x256xi32>
    %4 = arith.subi %0, %3 : vector<1x256xi32>
    %5 = arith.select %2, %0, %4 : vector<1x256xi1>, vector<1x256xi32>
    %6 = arith.sitofp %5 : vector<1x256xi32> to vector<1x256xf32>
    %cst = arith.constant -0.0719557852 : f32
    %7 = vector.broadcast %cst : f32 to vector<1x256xf32>
    %8 = arith.mulf %6, %7 : vector<1x256xf32>
    %9 = math.exp %8 : vector<1x256xf32>
    %c0 = arith.constant 0 : index
    %c0_1 = arith.constant 0 : index
    %10 = vector.load %arg0[%c0, %c0_1] : memref<8x1xf32, #tpu.memory_space<vmem>>, vector<8x1xf32>
    %11 = vector.broadcast %10 : vector<8x1xf32> to vector<8x256xf32>
    %12 = vector.broadcast %9 : vector<1x256xf32> to vector<8x256xf32>
    %13 = arith.mulf %11, %12 : vector<8x256xf32>
    %14 = math.sin %13 : vector<8x256xf32>
    %15 = math.cos %13 : vector<8x256xf32>
    %16 = vector.shape_cast %2 : vector<1x256xi1> to vector<1x256xi1>
    %17 = vector.broadcast %16 : vector<1x256xi1> to vector<8x256xi1>
    %18 = arith.select %17, %14, %15 : vector<8x256xi1>, vector<8x256xf32>
    %c0_2 = arith.constant 0 : index
    %c0_3 = arith.constant 0 : index
    %19 = vector.load %arg1[%c0_2, %c0_3] : memref<8x256xf32, #tpu.memory_space<vmem>>, vector<8x256xf32>
    tpu.vector_store %arg1[%c0_2, %c0_3], %18 {strides = array<i32>} : memref<8x256xf32, #tpu.memory_space<vmem>>, vector<8x256xf32>,
    return
  }
}

</mosaic_0001>

<bundles_post_ra>
// kernel: positional_encoding.1
= control target key start
LH: loop header
LB: loop body
LE: loop exit
PB: predicated region body
PF: predicated region fallthrough
CT: control target
= control target key end

     0   :  { %v529_v1 = vmov 0   ;;  %s583_s0 = inlined_call_operand.vmem [shape: f32[8,1], index: 0, kind: input, shape index: {}]   ;;  %s584_s1 = inlined_call_operand.hbm [shape: f32[8,256], index: 1, kind: output, shape index: {}]  }
   0x1   :  { %v25_v0 = vld [vmem:[%s583_s0] sm:$0xff]  ;;  %498 = vset.pattern.permute.xlu0 %v529_v1 }
   0x2   :  { %28 = vperm.xlu0 %498, %v25_v0  }
   0x3   :  { %6 = vsyncpa [#allocation3], 0  ;;  %v9_v2 = vlaneseq  ;;  %v530_v20 = vmov 683565275   ;;  %v531_v22 = vmov 2475754826  }
   0x4   :  { %v532_v25 = vmov 2131351028   ;;  %v533_v28 = vmov 2102212464   ;;  %v534_v31 = vmov 920167782  }
   0x5   :  { %v10_v3 = vand.u32 127, %v9_v2  ;;  %v535_v34 = vmov 1326507024   ;;  %s536_s0 = smov [#allocation2]  }
   0x6   :  { %s461_s8 = sshll.u32 %s536_s0, 4  ;;  %s462_s8 = int_to_ptr.vmem [resolvable:$true] %s461_s8 }
   0x7   :  { %v17_v4 = vcvt.s32.f32 %v10_v3  ;;  %s505_s9 = scalar_lea.vmem %s462_s8, 256  ;;  %p510_p1 = scmp.lt.s32.totalorder %s462_s8, %s462_s8 }
   0x8   :  { %p506_p0 = scmp.ne.s32.totalorder %s462_s8, %s505_s9  ;;  %p511_p2 = scmp.lt.s32.totalorder %s505_s9, %s505_s9 }
   0x9   :  { %v19_v5 = vmul.f32 -0.071955785, %v17_v4 }
   0xa   :  { %p512_p3 = por %p511_p2, %p510_p1 }
   0xb   :  { %v21_v6 = vmul.f32 1.442695, %v19_v5 }
   0xc   :  { %p513_p4 = pnand %p512_p3, %p506_p0 }
   0xd   :  { %499 = vpow2.f32 %v21_v6 }
  0x17   :  { %v500_v7 = vpop.eup %499 }
  0x81   :  { %v29_v8 = vpop.permute.xlu0 %28 }
  0x82   :  { %v550_v9 = vmul.f32 %v500_v7, %v29_v8 }
  0x84   :  { %v36_v10 = vand.u32 2139095040, %v550_v9  ;;  %v33_v14 = vand.u32 2147483647, %v550_v9  ;;  %vm35_vm7 = vcmp.lt.s32.totalorder %v550_v9, 0  ;;  %vm125_vm15 = vweird.f32 %v550_v9 }
  0x86   :  { %v37_v11 = vshrl.u32 %v36_v10, 23  ;;  %v40_v17 = vand.u32 8388607, %v33_v14  ;;  %vm34_vm8 = vcmp.le.f32.partialorder %v33_v14, 0.7853982 }
  0x88   :  { %v470_v12 = vadd.s32 4294967169, %v37_v11  ;;  %v41_v36 = vor.u32 8388608, %v40_v17 }
  0x8a   :  { %v43_v13 = vadd.s32 1, %v470_v12  ;;  %v81_v50 = vshll.u32 %v41_v36, 8 }
  0x8c   :  { %vm44_vm0 = vcmp.gt.s32.totalorder %v43_v13, 0 }
  0x8d   :  { %v45_v15 = vsel %vm44_vm0, %v43_v13, 0 }
  0x8e   :  { %v47_v16 = vand.u32 31, %v45_v15  ;;  %v46_v19 = vshrl.u32 %v45_v15, 5 }
  0x90   :  { %v48_v18 = vsub.s32 32, %v47_v16  ;;  %v50_v21 = vshll.u32 %v530_v20, %v47_v16  ;;  %v53_v23 = vshll.u32 %v531_v22, %v47_v16  ;;  %v56_v27 = vshll.u32 %v532_v25, %v47_v16 }
  0x91   :  { %v59_v30 = vshll.u32 %v533_v28, %v47_v16  ;;  %v62_v33 = vshll.u32 %v534_v31, %v47_v16  ;;  %vm65_vm1 = vcmp.lt.s32.totalorder %v46_v19, 1  ;;  %vm68_vm2 = vcmp.lt.s32.totalorder %v46_v19, 4 }
  0x92   :  { %v51_v24 = vshrl.u32 %v531_v22, %v48_v18  ;;  %v54_v26 = vshrl.u32 %v532_v25, %v48_v18  ;;  %v57_v29 = vshrl.u32 %v533_v28, %v48_v18  ;;  %v60_v32 = vshrl.u32 %v534_v31, %v48_v18 }
  0x93   :  { %v63_v35 = vshrl.u32 %v535_v34, %v48_v18  ;;  %v49_v45 = vshrl.u32 %v530_v20, %v48_v18  ;;  %vm67_vm3 = vcmp.lt.s32.totalorder %v46_v19, 3  ;;  %vm66_vm4 = vcmp.lt.s32.totalorder %v46_v19, 2 }
  0x94   :  { %v52_v37 = vor.u32 %v51_v24, %v50_v21  ;;  %v55_v38 = vor.u32 %v54_v26, %v53_v23  ;;  %v58_v39 = vor.u32 %v57_v29, %v56_v27  ;;  %v61_v40 = vor.u32 %v60_v32, %v59_v30 }
  0x95   :  { %v64_v41 = vor.u32 %v63_v35, %v62_v33 }
  0x96   :  { %v70_v42 = vsel %vm68_vm2, %v58_v39, 2102212464  ;;  %v73_v43 = vsel %vm65_vm1, %v52_v37, %v55_v38  ;;  %v77_v44 = vsel %vm65_vm1, %v55_v38, %v58_v39  ;;  %v74_v46 = vsel %vm68_vm2, %v61_v40, 920167782 }
  0x97   :  { %v78_v47 = vsel %vm68_vm2, %v64_v41, 1326507024  ;;  %v75_v48 = vsel %vm67_vm3, %v58_v39, %v74_v46  ;;  %v69_v51 = vsel %vm65_vm1, %v49_v45, %v52_v37  ;;  %v71_v52 = vsel %vm67_vm3, %v55_v38, %v70_v42 }
  0x98   :  { %v79_v49 = vsel %vm67_vm3, %v61_v40, %v78_v47  ;;  %v76_v53 = vsel %vm66_vm4, %v73_v43, %v75_v48  ;;  %v72_v59 = vsel %vm66_vm4, %v69_v51, %v71_v52 }
  0x99   :  { %v80_v54 = vsel %vm66_vm4, %v77_v44, %v79_v49  ;;  %v559_v57 = vmul.u32.u64.low %v81_v50, %v76_v53  ;;  %v560_v58 = vmul.u32.u64.high %v81_v50, %v76_v53, %v559_v57  ;;  %v88_v61 = vmul.u32 %v81_v50, %v72_v59 }
  0x9a   :  { %v556_v55 = vmul.u32.u64.low %v81_v50, %v80_v54  ;;  %v557_v56 = vmul.u32.u64.high %v81_v50, %v80_v54, %v556_v55 }
  0x9b   :  { %v91_v60 = vadd.s32 1, %v560_v58 }
  0x9c   :  { %vm90_vm5 = vc.u32 %v557_v56, %v559_v57  ;;  %v89_v10 = vadd.s32 %v559_v57, %v557_v56 }
  0x9d   :  { %v92_v62 = vsel %vm90_vm5, %v91_v60, %v560_v58 }
  0x9e   :  { %v93_v63 = vadd.s32 %v92_v62, %v88_v61 }
  0xa0   :  { %v94_v0 = vadd.s32 536870912, %v93_v63 }
  0xa2   :  { %v95_v1 = vshrl.u32 %v94_v0, 30 }
  0xa4   :  { %v96_v2 = vshll.u32 %v95_v1, 30  ;;  %v119_v23 = vsub.s32 4, %v95_v1 }
  0xa6   :  { %v97_v3 = vsub.s32 %v93_v63, %v96_v2  ;;  %v120_v26 = vsel %vm35_vm7, %v119_v23, %v95_v1 }
  0xa7   :  { %v122_v28 = vsel %vm34_vm8, 0, %v120_v26 }
  0xa8   :  { %v99_v4 = vsub.s32 0, %v97_v3  ;;  %v126_v29 = vadd.s32 3, %v122_v28  ;;  %v437_v31 = vand.u32 3, %v122_v28 }
  0xaa   :  { %v471_v5 = vmin.u32 %v99_v4, %v97_v3  ;;  %v127_v30 = vand.u32 3, %v126_v29  ;;  %vm442_vm10 = vcmp.eq.s32.totalorder %v437_v31, 2  ;;  %vm439_vm12 = vcmp.eq.s32.totalorder %v437_v31, 0 }
  0xab   :  { %vm438_vm14 = vcmp.lt.s32.totalorder %v437_v31, 2 }
  0xac   :  { %v101_v6 = vclz %v471_v5  ;;  %vm132_vm9 = vcmp.eq.s32.totalorder %v127_v30, 2  ;;  %vm129_vm11 = vcmp.eq.s32.totalorder %v127_v30, 0  ;;  %vm128_vm13 = vcmp.lt.s32.totalorder %v127_v30, 2 }
  0xae   :  { %v472_v7 = vadd.s32 4294967294, %v101_v6 }
  0xb0   :  { %vm473_vm6 = vcmp.lt.s32.totalorder %v472_v7, 0 }
  0xb1   :  { %v104_v8 = vsel %vm473_vm6, 0, %v472_v7 }
  0xb2   :  { %v105_v11 = vsub.s32 32, %v104_v8  ;;  %v109_v12 = vsub.s32 4294967266, %v104_v8  ;;  %v106_v13 = vshll.u32 %v97_v3, %v104_v8 }
  0xb4   :  { %v107_v15 = vshrl.u32 %v89_v10, %v105_v11  ;;  %v110_v16 = vadd.s32 127, %v109_v12 }
  0xb6   :  { %v108_v17 = vor.u32 %v107_v15, %v106_v13  ;;  %v111_v18 = vshll.u32 %v110_v16, 23 }
  0xb8   :  { %v112_v19 = vor.u32 4788187, %v111_v18  ;;  %v115_v21 = vcvt.s32.f32 %v108_v17 }
  0xba   :  { %v113_v20 = vand.u32 2147483647, %v112_v19 }
  0xbc   :  { %v116_v22 = vmul.f32 %v115_v21, %v113_v20 }
  0xbe   :  { %v117_v24 = vxor.u32 2147483648, %v116_v22 }
  0xc0   :  { %v118_v25 = vsel %vm35_vm7, %v117_v24, %v116_v22 }
  0xc1   :  { %v121_v27 = vsel %vm34_vm8, %v550_v9, %v118_v25 }
  0xc2   :  { %501 = vcosq.f32 %v121_v27 }
  0xc3   :  { %503 = vsinq.f32 %v121_v27 }
  0xcc   :  { %v502_v32 = vpop.eup %501 }
  0xcd   :  { %v504_v33 = vpop.eup %503  ;;  %v133_v34 = vxor.u32 2147483648, %v502_v32 }
  0xce   :  { %v130_v35 = vxor.u32 2147483648, %v504_v33 }
  0xcf   :  { %v134_v14 = vsel %vm132_vm9, %v133_v34, %v504_v33  ;;  %v444_v36 = vsel %vm442_vm10, %v133_v34, %v504_v33 }
  0xd0   :  { %v131_v37 = vsel %vm129_vm11, %v502_v32, %v130_v35  ;;  %v441_v38 = vsel %vm439_vm12, %v502_v32, %v130_v35 }
  0xd1   :  { %v135_v39 = vsel %vm128_vm13, %v131_v37, %v134_v14  ;;  %v445_v40 = vsel %vm438_vm14, %v441_v38, %v444_v36 }
  0xd2   :  { %v136_v41 = vsel %vm125_vm15, nan, %v135_v39  ;;  %v446_v42 = vsel %vm125_vm15, nan, %v445_v40 }
  0xd3   :  { %453 = vst [vmem:[#allocation2] sm:$0xff] %v136_v41  ;;  %454 = vst [vmem:[#allocation2 + $0x8] sm:$0xff] %v446_v42 }
  0xd4   :  { %516 = shalt.err (!%p513_p4)
}
  0xd5   :  { %s517_s12 = scalar_lea.hbm %s584_s1, 256 }
  0xd6   :  { %p518_p5 = scmp.ne.s32.totalorder %s584_s1, %s517_s12  ;;  %p521_p6 = scmp.lt.u32.totalorder %s517_s12, %s584_s1 }
  0xd8   :  { %p523_p7 = pnand %p521_p6, %p518_p5 }
  0xda   :  { %526 = shalt.err (!%p523_p7)
}
  0xdb   :  { %464 = dma.vmem_to_hbm [thread:$0]  %s462_s8, 256, %s584_s1, [#allocation3]  }
  0xdc   :  { %527 = dma.done.wait [#allocation3], 256  }
  0xdd   :  { %528 = vsyncadd [#allocation3], 4294967040 }
  0xde   :  { %468 = vsyncpa [#allocation3], 1 }

</bundles_post_ra>
